<compile_context>
chip_gen: v7x
topology: tpu7x:2x2x1
jax: 0.10.0
libtpu: 0.0.40
codegen_flags: <defaults>
</compile_context>

<pallas_src>
import functools

import jax
import jax.numpy as jnp
from jax.experimental import pallas as pl
from jax.experimental.pallas import tpu as pltpu


def _round_up(x: int, m: int) -> int:
    return ((x + m - 1) // m) * m


def _round_down(x: int, m: int) -> int:
    return (x // m) * m


# VMEM sizing: budget well under v7x's 64 MiB physical VMEM (it has the
# smallest VMEM of v5e/v6e/v7x); the explicit limit also lifts v5e's 16 MiB
# default scoped limit.
_VMEM_BUDGET_BYTES = 36 * 1024 * 1024
_VMEM_LIMIT_BYTES = 48 * 1024 * 1024
# Aim for ~8 MiB of input HBM traffic per grid step to amortize the ~0.35 us
# fixed per-step overhead.
_TARGET_INPUT_BYTES_PER_STEP = 8 * 1024 * 1024


def _matcher_kernel(costs_ref, logits_ref, out_ref, *, coeff: float,
                    transpose_in_kernel: bool):
    """One batch tile.

    transpose_in_kernel=True : refs are [block_b, n]  (natural input layout)
    transpose_in_kernel=False: refs are [n, block_b]  (pre-transposed on host)
    out_ref                  : [1, block_b] int32
    """
    costs = costs_ref[...].astype(jnp.float32)
    logits = logits_ref[...].astype(jnp.float32)
    if transpose_in_kernel:
        # [block_b, n] -> [n, block_b]: batch onto the 128-wide lane axis,
        # trajectories onto sublanes.  Runs on the otherwise-idle XLU and
        # avoids a separate host-side transpose HBM pass.
        costs = costs.T
        logits = logits.T
    n = costs.shape[0]

    # Numerically-stable softmax numerator / denominator over trajectories
    # (sublane axis).
    m = jnp.max(logits, axis=0, keepdims=True)            # [1, block_b]
    e = jnp.exp(logits - m)                               # [n, block_b]
    s = jnp.sum(e, axis=0, keepdims=True)                 # [1, block_b] > 0

    # argmin(costs - (e/s)*coeff) == argmin(costs*s - e*coeff): s > 0 per
    # column, so no divide/reciprocal is needed (only exact ties can differ
    # from the softmax-then-subtract reference by ~1 ulp).
    combined = costs * s - e * coeff                      # [n, block_b]

    # argmin over trajectories with first-index tie-breaking.
    min_val = jnp.min(combined, axis=0, keepdims=True)    # [1, block_b]
    traj_iota = jax.lax.broadcasted_iota(jnp.int32, combined.shape, 0)
    masked_iota = jnp.where(combined == min_val, traj_iota, jnp.int32(n))
    idx = jnp.min(masked_iota, axis=0, keepdims=True)     # [1, block_b]
    # Degenerate all-NaN columns never match min_val; mirror argmin's 0.
    idx = jnp.where(idx >= n, 0, idx)

    out_ref[...] = idx.astype(jnp.int32)                  # lane-dense store


def _pick_block_b(b: int, n: int, itemsize: int, fused: bool) -> int:
    """Batch-lane tile size: big enough to amortize per-step overhead, small
    enough to (a) fit the VMEM budget and (b) leave >= 2 grid steps so v7x's
    two TensorCores both get work."""
    n_sub = _round_up(n, 8)
    n_lane = _round_up(n, 128)
    if fused:
        # [block_b, n] input buffers are lane-padded to multiples of 128 in
        # VMEM; plus f32 casts and ~6 [n, block_b] f32/int32 temporaries.
        per_col = 2 * 2 * n_lane * itemsize + 2 * n_lane * 4 + 8 * n_sub * 4
    else:
        per_col = 2 * 2 * n_sub * itemsize + 2 * n_sub * 4 + 8 * n_sub * 4
    cap_vmem = _VMEM_BUDGET_BYTES // per_col
    cap_steps = _round_up(pl.cdiv(b, 2), 128)          # keep grid >= 2 steps
    tgt = _TARGET_INPUT_BYTES_PER_STEP // max(1, 2 * n * itemsize)
    blk = min(tgt, cap_vmem, cap_steps)
    return max(128, _round_down(blk, 128))


def _build_matcher_call(b: int, n: int, in_dtype, coeff: float,
                        block_b: int, fused: bool):
    kernel = functools.partial(_matcher_kernel, coeff=float(coeff),
                               transpose_in_kernel=fused)
    if fused:
        in_spec = pl.BlockSpec((block_b, n), lambda i: (i, 0))   # [b, n] input
    else:
        in_spec = pl.BlockSpec((n, block_b), lambda i: (0, i))   # [n, b] input
    itemsize = jnp.dtype(in_dtype).itemsize
    cost = pl.CostEstimate(
        flops=8 * b * n,
        transcendentals=b * n,
        bytes_accessed=2 * b * n * itemsize + 4 * b)
    return pl.pallas_call(
        kernel,
        out_shape=jax.ShapeDtypeStruct((1, b), jnp.int32),
        grid=(pl.cdiv(b, block_b),),
        in_specs=[in_spec, in_spec],
        out_specs=pl.BlockSpec((1, block_b), lambda i: (0, i)),
        compiler_params=pltpu.CompilerParams(
            dimension_semantics=("parallel",),
            vmem_limit_bytes=_VMEM_LIMIT_BYTES),
        cost_estimate=cost,
    )


@functools.lru_cache(maxsize=None)
def _kernel_transpose_ok(n: int) -> bool:
    """Check (once per trajectory count) that the in-kernel transpose path
    lowers through Mosaic and matches the reference on a tiny shape."""
    try:
        b = 128
        kc, kl = jax.random.split(jax.random.PRNGKey(42))
        costs = jax.random.uniform(kc, (b, n), dtype=jnp.float32)
        logits = jax.random.normal(kl, (b, n), dtype=jnp.float32)
        call = _build_matcher_call(b, n, costs.dtype, 1.0, block_b=128,
                                   fused=True)
        out = jax.block_until_ready(call(costs, logits))[0]
        ref = jnp.argmin(costs - jax.nn.softmax(logits, axis=-1), axis=-1)
        return bool(jnp.all(out == ref.astype(jnp.int32)))
    except Exception:
        return False


def trajectory_matcher(trajectory_costs: jax.Array,
                       trajectory_logits: jax.Array,
                       cost_prob_coeff: float = 1.0,
                       *,
                       block_b: int | None = None,
                       transpose_strategy: str = "auto") -> jax.Array:
    """Pallas TPU implementation of TrajectoryMatcher.forward.

    :param trajectory_costs:  [batch_size, num_trajectories] float (f32/bf16)
    :param trajectory_logits: [batch_size, num_trajectories] float (f32/bf16)
    :param cost_prob_coeff:   coefficient for the trajectory probability cost
    :param block_b:           override batch columns per grid step (mult. of 128)
    :param transpose_strategy: "auto" | "kernel" | "host"
    :return: [batch_size] int32 indices of the lowest-cost trajectories
             (torch.argmin returns int64; int32 here).
    """
    assert trajectory_costs.shape == trajectory_logits.shape
    assert trajectory_costs.ndim == 2
    b, n = trajectory_costs.shape

    if transpose_strategy == "auto":
        fused = _kernel_transpose_ok(n)
    elif transpose_strategy == "kernel":
        fused = True
    elif transpose_strategy == "host":
        fused = False
    else:
        raise ValueError(f"unknown transpose_strategy: {transpose_strategy!r}")

    itemsize = jnp.dtype(trajectory_costs.dtype).itemsize
    if block_b is None:
        blk = _pick_block_b(b, n, itemsize, fused)
    else:
        blk = max(128, _round_down(int(block_b), 128))

    call = _build_matcher_call(b, n, trajectory_costs.dtype, cost_prob_coeff,
                               blk, fused)
    if fused:
        out = call(trajectory_costs, trajectory_logits)
    else:
        # Fallback only: one extra HBM pass per input for the XLA transpose,
        # used when Mosaic cannot lower the in-kernel flip for this n.
        out = call(jnp.transpose(trajectory_costs),
                   jnp.transpose(trajectory_logits))
    return out[0]


def _reference(costs, logits, coeff):
    probs = jax.nn.softmax(logits.astype(jnp.float32), axis=-1)
    return jnp.argmin(costs.astype(jnp.float32) - probs * coeff, axis=-1)


if __name__ == "__main__":
    # TrajectoryMatcher has no learned parameters; only cost_prob_coeff.
    cost_prob_coeff = 1.0

    key = jax.random.PRNGKey(0)
    k_costs, k_logits = jax.random.split(key)
    batch_size, num_trajectories = 8, 16  # small shapes consistent with forward

    trajectory_costs = jax.random.uniform(
        k_costs, (batch_size, num_trajectories), dtype=jnp.float32)
    trajectory_logits = jax.random.normal(
        k_logits, (batch_size, num_trajectories), dtype=jnp.float32)

    indices = trajectory_matcher(trajectory_costs, trajectory_logits,
                                 cost_prob_coeff)
    indices = jax.block_until_ready(indices)

    ref = _reference(trajectory_costs, trajectory_logits, cost_prob_coeff)
    assert indices.shape == (batch_size,)
    assert indices.dtype == jnp.int32  # torch.argmin returns int64; int32 here
    assert bool(jnp.all(indices == ref.astype(jnp.int32)))

    # Second check: non-multiple batch (partial last block, no padding) and an
    # odd trajectory count.
    k2c, k2l = jax.random.split(jax.random.PRNGKey(1))
    b2, n2 = 200, 7
    costs2 = jax.random.uniform(k2c, (b2, n2), dtype=jnp.float32)
    logits2 = jax.random.normal(k2l, (b2, n2), dtype=jnp.float32)
    idx2 = jax.block_until_ready(
        trajectory_matcher(costs2, logits2, cost_prob_coeff))
    ref2 = _reference(costs2, logits2, cost_prob_coeff)
    assert idx2.shape == (b2,)
    assert bool(jnp.all(idx2 == ref2.astype(jnp.int32)))

    print("KERNEL_OK")
</pallas_src>

<mosaic_0001>
module attributes {stable_mosaic.version = 11 : i64} {
  func.func @_matcher_kernel(%arg0: i32, %arg1: memref<128x16xf32, #tpu.memory_space<vmem>>, %arg2: memref<128x16xf32, #tpu.memory_space<vmem>>, %arg3: memref<1x128xi32, #tpu.memory_space<vmem>>) attributes {dimension_semantics = [#tpu.dimension_semantics<parallel>], iteration_bounds = array<i64: 1>, scalar_prefetch = 0 : i64, scratch_operands = 0 : i64, tpu.core_type = #tpu.core_type<tc>, window_params = [{transform_indices = @transform_0, window_bounds = array<i64: 128, 16>}, {transform_indices = @transform_1, window_bounds = array<i64: 128, 16>}, {transform_indices = @transform_2, window_bounds = array<i64: 1, 128>}]} {
    %c0 = arith.constant 0 : index
    %c0_0 = arith.constant 0 : index
    %0 = vector.load %arg1[%c0, %c0_0] : memref<128x16xf32, #tpu.memory_space<vmem>>, vector<128x16xf32>
    %c0_1 = arith.constant 0 : index
    %c0_2 = arith.constant 0 : index
    %1 = vector.load %arg2[%c0_1, %c0_2] : memref<128x16xf32, #tpu.memory_space<vmem>>, vector<128x16xf32>
    %2 = tpu.transpose %0, [1, 0] : vector<128x16xf32> -> vector<16x128xf32>
    %3 = tpu.transpose %1, [1, 0] : vector<128x16xf32> -> vector<16x128xf32>
    %cst = arith.constant dense<0xFF800000> : vector<128xf32>
    %4 = vector.multi_reduction <maximumf>, %3, %cst [0] : vector<16x128xf32> to vector<128xf32>
    %5 = vector.shape_cast %4 : vector<128xf32> to vector<1x128xf32>
    %6 = vector.broadcast %5 : vector<1x128xf32> to vector<16x128xf32>
    %7 = arith.subf %3, %6 : vector<16x128xf32>
    %8 = math.exp %7 : vector<16x128xf32>
    %cst_3 = arith.constant dense<0.000000e+00> : vector<128xf32>
    %9 = vector.multi_reduction <add>, %8, %cst_3 [0] : vector<16x128xf32> to vector<128xf32>
    %10 = vector.shape_cast %9 : vector<128xf32> to vector<1x128xf32>
    %11 = vector.broadcast %10 : vector<1x128xf32> to vector<16x128xf32>
    %12 = arith.mulf %2, %11 : vector<16x128xf32>
    %cst_4 = arith.constant 1.000000e+00 : f32
    %13 = vector.broadcast %cst_4 : f32 to vector<16x128xf32>
    %14 = arith.mulf %8, %13 : vector<16x128xf32>
    %15 = arith.subf %12, %14 : vector<16x128xf32>
    %cst_5 = arith.constant dense<0x7F800000> : vector<128xf32>
    %16 = vector.multi_reduction <minimumf>, %15, %cst_5 [0] : vector<16x128xf32> to vector<128xf32>
    %17 = vector.shape_cast %16 : vector<128xf32> to vector<1x128xf32>
    %18 = tpu.iota {dimensions = array<i32: 0>} : vector<16x128xi32>
    %19 = vector.broadcast %17 : vector<1x128xf32> to vector<16x128xf32>
    %20 = arith.cmpf oeq, %15, %19 : vector<16x128xf32>
    %c16_i32 = arith.constant 16 : i32
    %21 = vector.broadcast %c16_i32 : i32 to vector<16x128xi32>
    %22 = arith.select %20, %18, %21 : vector<16x128xi1>, vector<16x128xi32>
    %cst_6 = arith.constant dense<2147483647> : vector<128xi32>
    %23 = vector.multi_reduction <minsi>, %22, %cst_6 [0] : vector<16x128xi32> to vector<128xi32>
    %24 = vector.shape_cast %23 : vector<128xi32> to vector<1x128xi32>
    %c16_i32_7 = arith.constant 16 : i32
    %25 = vector.broadcast %c16_i32_7 : i32 to vector<1x128xi32>
    %26 = arith.cmpi sge, %24, %25 : vector<1x128xi32>
    %c0_i32 = arith.constant 0 : i32
    %27 = vector.broadcast %c0_i32 : i32 to vector<1x128xi32>
    %28 = arith.select %26, %27, %24 : vector<1x128xi1>, vector<1x128xi32>
    %c0_8 = arith.constant 0 : index
    %c0_9 = arith.constant 0 : index
    %29 = vector.load %arg3[%c0_8, %c0_9] : memref<1x128xi32, #tpu.memory_space<vmem>>, vector<1x128xi32>
    tpu.vector_store %arg3[%c0_8, %c0_9], %28 {strides = array<i32>} : memref<1x128xi32, #tpu.memory_space<vmem>>, vector<1x128xi32>,
    return
  }
  func.func @transform_0(%arg0: i32) -> (i32, i32) {
    %c0_i32 = arith.constant 0 : i32
    %c0_i32_0 = arith.constant 0 : i32
    return %arg0, %c0_i32 : i32, i32
  }
  func.func @transform_1(%arg0: i32) -> (i32, i32) {
    %c0_i32 = arith.constant 0 : i32
    %c0_i32_0 = arith.constant 0 : i32
    return %arg0, %c0_i32 : i32, i32
  }
  func.func @transform_2(%arg0: i32) -> (i32, i32) {
    %c0_i32 = arith.constant 0 : i32
    %c0_i32_0 = arith.constant 0 : i32
    return %c0_i32, %arg0 : i32, i32
  }
}

module attributes {stable_mosaic.version = 11 : i64} {
  func.func @_matcher_kernel(%arg0: i32, %arg1: memref<16x128xf32, #tpu.memory_space<vmem>>, %arg2: memref<16x128xf32, #tpu.memory_space<vmem>>, %arg3: memref<1x128xi32, #tpu.memory_space<vmem>>) attributes {dimension_semantics = [#tpu.dimension_semantics<parallel>], iteration_bounds = array<i64: 1>, scalar_prefetch = 0 : i64, scratch_operands = 0 : i64, tpu.core_type = #tpu.core_type<tc>, window_params = [{transform_indices = @transform_0, window_bounds = array<i64: 16, 128>}, {transform_indices = @transform_1, window_bounds = array<i64: 16, 128>}, {transform_indices = @transform_2, window_bounds = array<i64: 1, 128>}]} {
    %c0 = arith.constant 0 : index
    %c0_0 = arith.constant 0 : index
    %0 = vector.load %arg1[%c0, %c0_0] : memref<16x128xf32, #tpu.memory_space<vmem>>, vector<16x128xf32>
    %c0_1 = arith.constant 0 : index
    %c0_2 = arith.constant 0 : index
    %1 = vector.load %arg2[%c0_1, %c0_2] : memref<16x128xf32, #tpu.memory_space<vmem>>, vector<16x128xf32>
    %cst = arith.constant dense<0xFF800000> : vector<128xf32>
    %2 = vector.multi_reduction <maximumf>, %1, %cst [0] : vector<16x128xf32> to vector<128xf32>
    %3 = vector.shape_cast %2 : vector<128xf32> to vector<1x128xf32>
    %4 = vector.broadcast %3 : vector<1x128xf32> to vector<16x128xf32>
    %5 = arith.subf %1, %4 : vector<16x128xf32>
    %6 = math.exp %5 : vector<16x128xf32>
    %cst_3 = arith.constant dense<0.000000e+00> : vector<128xf32>
    %7 = vector.multi_reduction <add>, %6, %cst_3 [0] : vector<16x128xf32> to vector<128xf32>
    %8 = vector.shape_cast %7 : vector<128xf32> to vector<1x128xf32>
    %9 = vector.broadcast %8 : vector<1x128xf32> to vector<16x128xf32>
    %10 = arith.mulf %0, %9 : vector<16x128xf32>
    %cst_4 = arith.constant 1.000000e+00 : f32
    %11 = vector.broadcast %cst_4 : f32 to vector<16x128xf32>
    %12 = arith.mulf %6, %11 : vector<16x128xf32>
    %13 = arith.subf %10, %12 : vector<16x128xf32>
    %cst_5 = arith.constant dense<0x7F800000> : vector<128xf32>
    %14 = vector.multi_reduction <minimumf>, %13, %cst_5 [0] : vector<16x128xf32> to vector<128xf32>
    %15 = vector.shape_cast %14 : vector<128xf32> to vector<1x128xf32>
    %16 = tpu.iota {dimensions = array<i32: 0>} : vector<16x128xi32>
    %17 = vector.broadcast %15 : vector<1x128xf32> to vector<16x128xf32>
    %18 = arith.cmpf oeq, %13, %17 : vector<16x128xf32>
    %c16_i32 = arith.constant 16 : i32
    %19 = vector.broadcast %c16_i32 : i32 to vector<16x128xi32>
    %20 = arith.select %18, %16, %19 : vector<16x128xi1>, vector<16x128xi32>
    %cst_6 = arith.constant dense<2147483647> : vector<128xi32>
    %21 = vector.multi_reduction <minsi>, %20, %cst_6 [0] : vector<16x128xi32> to vector<128xi32>
    %22 = vector.shape_cast %21 : vector<128xi32> to vector<1x128xi32>
    %c16_i32_7 = arith.constant 16 : i32
    %23 = vector.broadcast %c16_i32_7 : i32 to vector<1x128xi32>
    %24 = arith.cmpi sge, %22, %23 : vector<1x128xi32>
    %c0_i32 = arith.constant 0 : i32
    %25 = vector.broadcast %c0_i32 : i32 to vector<1x128xi32>
    %26 = arith.select %24, %25, %22 : vector<1x128xi1>, vector<1x128xi32>
    %c0_8 = arith.constant 0 : index
    %c0_9 = arith.constant 0 : index
    %27 = vector.load %arg3[%c0_8, %c0_9] : memref<1x128xi32, #tpu.memory_space<vmem>>, vector<1x128xi32>
    tpu.vector_store %arg3[%c0_8, %c0_9], %26 {strides = array<i32>} : memref<1x128xi32, #tpu.memory_space<vmem>>, vector<1x128xi32>,
    return
  }
  func.func @transform_0(%arg0: i32) -> (i32, i32) {
    %c0_i32 = arith.constant 0 : i32
    %c0_i32_0 = arith.constant 0 : i32
    return %c0_i32, %arg0 : i32, i32
  }
  func.func @transform_1(%arg0: i32) -> (i32, i32) {
    %c0_i32 = arith.constant 0 : i32
    %c0_i32_0 = arith.constant 0 : i32
    return %c0_i32, %arg0 : i32, i32
  }
  func.func @transform_2(%arg0: i32) -> (i32, i32) {
    %c0_i32 = arith.constant 0 : i32
    %c0_i32_0 = arith.constant 0 : i32
    return %c0_i32, %arg0 : i32, i32
  }
}

</mosaic_0001>

<bundles_post_ra>
// kernel: tpu_custom_call.1
= control target key start
LH: loop header
LB: loop body
LE: loop exit
PB: predicated region body
PF: predicated region fallthrough
CT: control target
= control target key end

     0   :  { %s327_s0 = inlined_call_operand.vmem [shape: f32[128,16], index: 0, kind: input, shape index: {}]   ;;  %s328_s1 = inlined_call_operand.vmem [shape: f32[128,16], index: 1, kind: input, shape index: {}]   ;;  %s329_s2 = inlined_call_operand.hbm [shape: s32[1,128], index: 2, kind: output, shape index: {}]  }
   0x1   :  { %v28_v0 = vld [vmem:[%s328_s1] sm:$0xff]  ;;  %v29_v1 = vld [vmem:[%s328_s1 + $0x8] sm:$0xff]  ;;  %v30_v4 = vld [vmem:[%s328_s1 + $0x10] sm:$0xff] }
   0x2   :  { %76 = vxpose.xlu0.b32.start [1/16] (narrow) %v28_v0, 16  ;;  %v12_v2 = vld [vmem:[%s327_s0] sm:$0xff]  ;;  %v13_v3 = vld [vmem:[%s327_s0 + $0x8] sm:$0xff]  ;;  %v14_v5 = vld [vmem:[%s327_s0 + $0x10] sm:$0xff] }
   0x3   :  { %44 = vxpose.xlu1.b32.start [1/16] (narrow) %v12_v2, 16  ;;  %v31_v6 = vld [vmem:[%s328_s1 + $0x18] sm:$0xff] }
   0x6   :  { %77 = vxpose.xlu0.b32.cont [2/16] (narrow) %v29_v1, 16 }
   0x7   :  { %45 = vxpose.xlu1.b32.cont [2/16] (narrow) %v13_v3, 16 }
   0xa   :  { %78 = vxpose.xlu0.b32.cont [3/16] (narrow) %v30_v4, 16 }
   0xb   :  { %7 = vsyncpa [#allocation3], 0  ;;  %46 = vxpose.xlu1.b32.cont [3/16] (narrow) %v14_v5, 16  ;;  %v15_v7 = vld [vmem:[%s327_s0 + $0x18] sm:$0xff]  ;;  %v32_v8 = vld [vmem:[%s328_s1 + $0x20] sm:$0xff]  ;;  %v139_v62 = vlaneseq }
   0xc   :  { %v16_v9 = vld [vmem:[%s327_s0 + $0x20] sm:$0xff]  ;;  %v33_v10 = vld [vmem:[%s328_s1 + $0x28] sm:$0xff]  ;;  %v34_v12 = vld [vmem:[%s328_s1 + $0x30] sm:$0xff] }
   0xd   :  { %v17_v11 = vld [vmem:[%s327_s0 + $0x28] sm:$0xff]  ;;  %v18_v13 = vld [vmem:[%s327_s0 + $0x30] sm:$0xff]  ;;  %v35_v14 = vld [vmem:[%s328_s1 + $0x38] sm:$0xff]  ;;  %v140_v1 = vshrl.u32 %v139_v62, 7 }
   0xe   :  { %79 = vxpose.xlu0.b32.cont [4/16] (narrow) %v31_v6, 16  ;;  %v19_v15 = vld [vmem:[%s327_s0 + $0x38] sm:$0xff]  ;;  %v36_v16 = vld [vmem:[%s328_s1 + $0x40] sm:$0xff]  ;;  %v37_v18 = vld [vmem:[%s328_s1 + $0x48] sm:$0xff] }
   0xf   :  { %47 = vxpose.xlu1.b32.cont [4/16] (narrow) %v15_v7, 16  ;;  %v20_v17 = vld [vmem:[%s327_s0 + $0x40] sm:$0xff]  ;;  %v21_v19 = vld [vmem:[%s327_s0 + $0x48] sm:$0xff]  ;;  %v38_v20 = vld [vmem:[%s328_s1 + $0x50] sm:$0xff]  ;;  %v141_v4 = vadd.s32 8, %v140_v1 }
  0x10   :  { %v22_v21 = vld [vmem:[%s327_s0 + $0x50] sm:$0xff]  ;;  %v39_v22 = vld [vmem:[%s328_s1 + $0x58] sm:$0xff]  ;;  %v40_v24 = vld [vmem:[%s328_s1 + $0x60] sm:$0xff] }
  0x11   :  { %v23_v23 = vld [vmem:[%s327_s0 + $0x58] sm:$0xff]  ;;  %v24_v25 = vld [vmem:[%s327_s0 + $0x60] sm:$0xff]  ;;  %v41_v26 = vld [vmem:[%s328_s1 + $0x68] sm:$0xff] }
  0x12   :  { %80 = vxpose.xlu0.b32.cont [5/16] (narrow) %v32_v8, 16  ;;  %v25_v27 = vld [vmem:[%s327_s0 + $0x68] sm:$0xff]  ;;  %v42_v28 = vld [vmem:[%s328_s1 + $0x70] sm:$0xff]  ;;  %v43_v30 = vld [vmem:[%s328_s1 + $0x78] sm:$0xff] }
  0x13   :  { %48 = vxpose.xlu1.b32.cont [5/16] (narrow) %v16_v9, 16  ;;  %v26_v29 = vld [vmem:[%s327_s0 + $0x70] sm:$0xff]  ;;  %v27_v31 = vld [vmem:[%s327_s0 + $0x78] sm:$0xff]  ;;  %s203_s0 = smov [#allocation2]  }
  0x14   :  { %s166_s1 = sshll.u32 %s203_s0, 4  ;;  %s167_s1 = int_to_ptr.vmem [resolvable:$true] %s166_s1 }
  0x15   :  { %s179_s17 = scalar_lea.vmem %s167_s1, 16  ;;  %s183_s18 = scalar_lea.vmem %s167_s1, 32 }
  0x16   :  { %81 = vxpose.xlu0.b32.cont [6/16] (narrow) %v33_v10, 16  ;;  %p180_p0 = scmp.ne.s32.totalorder %s167_s1, %s179_s17  ;;  %p184_p1 = scmp.lt.s32.totalorder %s167_s1, %s167_s1 }
  0x17   :  { %49 = vxpose.xlu1.b32.cont [6/16] (narrow) %v17_v11, 16  ;;  %p185_p2 = scmp.lt.s32.totalorder %s183_s18, %s179_s17 }
  0x19   :  { %p186_p3 = por %p185_p2, %p184_p1 }
  0x1a   :  { %82 = vxpose.xlu0.b32.cont [7/16] (narrow) %v34_v12, 16 }
  0x1b   :  { %50 = vxpose.xlu1.b32.cont [7/16] (narrow) %v18_v13, 16  ;;  %p187_p4 = pnand %p186_p3, %p180_p0 }
  0x1e   :  { %83 = vxpose.xlu0.b32.cont [8/16] (narrow) %v35_v14, 16 }
  0x1f   :  { %51 = vxpose.xlu1.b32.cont [8/16] (narrow) %v19_v15, 16 }
  0x22   :  { %84 = vxpose.xlu0.b32.cont [9/16] (narrow) %v36_v16, 16 }
  0x23   :  { %52 = vxpose.xlu1.b32.cont [9/16] (narrow) %v20_v17, 16 }
  0x26   :  { %85 = vxpose.xlu0.b32.cont [10/16] (narrow) %v37_v18, 16 }
  0x27   :  { %53 = vxpose.xlu1.b32.cont [10/16] (narrow) %v21_v19, 16 }
  0x2a   :  { %86 = vxpose.xlu0.b32.cont [11/16] (narrow) %v38_v20, 16 }
  0x2b   :  { %54 = vxpose.xlu1.b32.cont [11/16] (narrow) %v22_v21, 16 }
  0x2e   :  { %87 = vxpose.xlu0.b32.cont [12/16] (narrow) %v39_v22, 16 }
  0x2f   :  { %55 = vxpose.xlu1.b32.cont [12/16] (narrow) %v23_v23, 16 }
  0x32   :  { %88 = vxpose.xlu0.b32.cont [13/16] (narrow) %v40_v24, 16 }
  0x33   :  { %56 = vxpose.xlu1.b32.cont [13/16] (narrow) %v24_v25, 16 }
  0x36   :  { %89 = vxpose.xlu0.b32.cont [14/16] (narrow) %v41_v26, 16 }
  0x37   :  { %57 = vxpose.xlu1.b32.cont [14/16] (narrow) %v25_v27, 16 }
  0x3a   :  { %90 = vxpose.xlu0.b32.cont [15/16] (narrow) %v42_v28, 16 }
  0x3b   :  { %58 = vxpose.xlu1.b32.cont [15/16] (narrow) %v26_v29, 16 }
  0x3e   :  { %91 = vxpose.xlu0.b32.end [16/16] (narrow) %v43_v30, 16 }
  0x3f   :  { %59 = vxpose.xlu1.b32.end [16/16] (narrow) %v27_v31, 16 }
  0x82   :  { %v92_v32 = vpop.trf.xlu0 }
  0x83   :  { %v60_v50 = vpop.trf.xlu1 }
  0x86   :  { %v93_v33 = vpop.trf.xlu0 }
  0x87   :  { %v108_v34 = vmax.f32 %v92_v32, %v93_v33  ;;  %v61_v54 = vpop.trf.xlu1 }
  0x89   :  { %v109_v35 = vrot.slane %v108_v34, 4 }
  0x8b   :  { %v110_v36 = vmax.f32 %v108_v34, %v109_v35 }
  0x8d   :  { %v111_v37 = vrot.slane %v110_v36, 2 }
  0x8f   :  { %v112_v38 = vmax.f32 %v110_v36, %v111_v37 }
  0x91   :  { %v113_v39 = vrot.slane %v112_v38, 1 }
  0x93   :  { %v114_v40 = vmax.f32 %v112_v38, %v113_v39 }
  0x95   :  { %v115_v41 = vsub.f32 %v92_v32, %v114_v40  ;;  %v116_v42 = vsub.f32 %v93_v33, %v114_v40 }
  0x97   :  { %v117_v43 = vmul.f32 1.442695, %v115_v41  ;;  %v119_v44 = vmul.f32 1.442695, %v116_v42 }
  0x99   :  { %175 = vpow2.f32 %v117_v43 }
  0x9a   :  { %177 = vpow2.f32 %v119_v44 }
  0xa3   :  { %v176_v45 = vpop.eup %175 }
  0xa4   :  { %v178_v46 = vpop.eup %177 }
  0xa5   :  { %v121_v47 = vadd.f32 %v178_v46, %v176_v45 }
  0xa7   :  { %v122_v48 = vrot.slane %v121_v47, 4 }
  0xa9   :  { %v123_v49 = vadd.f32 %v122_v48, %v121_v47 }
  0xab   :  { %v124_v51 = vrot.slane %v123_v49, 2 }
  0xad   :  { %v125_v52 = vadd.f32 %v124_v51, %v123_v49 }
  0xaf   :  { %v126_v53 = vrot.slane %v125_v52, 1 }
  0xb1   :  { %v127_v55 = vadd.f32 %v126_v53, %v125_v52 }
  0xb3   :  { %v128_v56 = vmul.f32 %v127_v55, %v60_v50  ;;  %v129_v57 = vmul.f32 %v127_v55, %v61_v54 }
  0xb5   :  { %v130_v58 = vsub.f32 %v128_v56, %v176_v45  ;;  %v131_v59 = vsub.f32 %v129_v57, %v178_v46 }
  0xb7   :  { %v132_v60 = vmin.f32 %v130_v58, %v131_v59 }
  0xb9   :  { %v133_v61 = vrot.slane %v132_v60, 4 }
  0xbb   :  { %v134_v63 = vmin.f32 %v132_v60, %v133_v61 }
  0xbd   :  { %v135_v0 = vrot.slane %v134_v63, 2 }
  0xbf   :  { %v136_v2 = vmin.f32 %v134_v63, %v135_v0 }
  0xc1   :  { %v137_v3 = vrot.slane %v136_v2, 1 }
  0xc3   :  { %v138_v5 = vmin.f32 %v136_v2, %v137_v3 }
  0xc5   :  { %vm142_vm0 = vcmp.eq.f32.partialorder %v130_v58, %v138_v5  ;;  %vm143_vm1 = vcmp.eq.f32.partialorder %v131_v59, %v138_v5 }
  0xc6   :  { %v144_v6 = vsel %vm142_vm0, %v140_v1, 16  ;;  %v145_v7 = vsel %vm143_vm1, %v141_v4, 16 }
  0xc7   :  { %vm146_vm2 = vcmp.lt.s32.totalorder %v144_v6, %v145_v7 }
  0xc8   :  { %v147_v8 = vsel %vm146_vm2, %v144_v6, %v145_v7 }
  0xc9   :  { %v148_v9 = vrot.slane %v147_v8, 4 }
  0xcb   :  { %vm149_vm3 = vcmp.lt.s32.totalorder %v147_v8, %v148_v9 }
  0xcc   :  { %v150_v10 = vsel %vm149_vm3, %v147_v8, %v148_v9 }
  0xcd   :  { %v151_v11 = vrot.slane %v150_v10, 2 }
  0xcf   :  { %vm152_vm4 = vcmp.lt.s32.totalorder %v150_v10, %v151_v11 }
  0xd0   :  { %v153_v12 = vsel %vm152_vm4, %v150_v10, %v151_v11 }
  0xd1   :  { %v154_v13 = vrot.slane %v153_v12, 1 }
  0xd3   :  { %vm155_vm5 = vcmp.lt.s32.totalorder %v153_v12, %v154_v13 }
  0xd4   :  { %v156_v14 = vsel %vm155_vm5, %v153_v12, %v154_v13 }
  0xd5   :  { %vm157_vm6 = vcmp.ge.s32.totalorder %v156_v14, 16 }
  0xd6   :  { %v158_v15 = vsel %vm157_vm6, 0, %v156_v14 }
  0xd7   :  { %159 = vst [vmem:[#allocation2] sm:$0x1] %v158_v15 }
  0xd8   :  { %190 = shalt.err (!%p187_p4)
}
  0xd9   :  { %s191_s21 = scalar_lea.hbm %s329_s2, 16 }
  0xda   :  { %p192_p5 = scmp.ne.s32.totalorder %s329_s2, %s191_s21  ;;  %p195_p6 = scmp.lt.u32.totalorder %s191_s21, %s329_s2 }
  0xdc   :  { %p197_p7 = pnand %p195_p6, %p192_p5 }
  0xde   :  { %200 = shalt.err (!%p197_p7)
}
  0xdf   :  { %169 = dma.vmem_to_hbm [thread:$0]  %s167_s1, 16, %s329_s2, [#allocation3]  }
  0xe0   :  { %201 = dma.done.wait [#allocation3], 16  }
  0xe1   :  { %202 = vsyncadd [#allocation3], 4294967280 }
  0xe2   :  { %173 = vsyncpa [#allocation3], 1 }

// kernel: tpu_custom_call.1
= control target key start
LH: loop header
LB: loop body
LE: loop exit
PB: predicated region body
PF: predicated region fallthrough
CT: control target
= control target key end

     0   :  { %s151_s0 = inlined_call_operand.vmem [shape: f32[16,8], index: 0, kind: input, shape index: {}]   ;;  %s152_s1 = inlined_call_operand.vmem [shape: f32[16,8], index: 1, kind: input, shape index: {}]   ;;  %s153_s2 = inlined_call_operand.hbm [shape: s32[1,8], index: 2, kind: output, shape index: {}]  }
   0x1   :  { %v14_v0 = vld [vmem:[%s152_s1] sm:$0xff]  ;;  %v15_v1 = vld [vmem:[%s152_s1 + $0x8] sm:$0xff] }
   0x2   :  { %7 = vsyncpa [#allocation3], 0  ;;  %v16_v2 = vmax.f32 %v14_v0, %v15_v1  ;;  %v12_v21 = vld [vmem:[%s151_s0] sm:$0xff]  ;;  %v13_v22 = vld [vmem:[%s151_s0 + $0x8] sm:$0xff]  ;;  %v47_v30 = vlaneseq  ;;  %s111_s0 = smov [#allocation2]  }
   0x3   :  { %s74_s16 = sshll.u32 %s111_s0, 4  ;;  %s75_s16 = int_to_ptr.vmem [resolvable:$true] %s74_s16 }
   0x4   :  { %v17_v3 = vrot.slane %v16_v2, 4  ;;  %v48_v33 = vshrl.u32 %v47_v30, 7  ;;  %s87_s17 = scalar_lea.vmem %s75_s16, 16  ;;  %s91_s18 = scalar_lea.vmem %s75_s16, 32 }
   0x5   :  { %p88_p0 = scmp.ne.s32.totalorder %s75_s16, %s87_s17  ;;  %p92_p1 = scmp.lt.s32.totalorder %s75_s16, %s75_s16 }
   0x6   :  { %v18_v4 = vmax.f32 %v16_v2, %v17_v3  ;;  %v49_v36 = vadd.s32 8, %v48_v33  ;;  %p93_p2 = scmp.lt.s32.totalorder %s91_s18, %s87_s17 }
   0x8   :  { %v19_v5 = vrot.slane %v18_v4, 2  ;;  %p94_p3 = por %p93_p2, %p92_p1 }
   0xa   :  { %v20_v6 = vmax.f32 %v18_v4, %v19_v5  ;;  %p95_p4 = pnand %p94_p3, %p88_p0 }
   0xc   :  { %v21_v7 = vrot.slane %v20_v6, 1 }
   0xe   :  { %v22_v8 = vmax.f32 %v20_v6, %v21_v7 }
  0x10   :  { %v23_v9 = vsub.f32 %v14_v0, %v22_v8  ;;  %v24_v10 = vsub.f32 %v15_v1, %v22_v8 }
  0x12   :  { %v25_v11 = vmul.f32 1.442695, %v23_v9  ;;  %v27_v12 = vmul.f32 1.442695, %v24_v10 }
  0x14   :  { %83 = vpow2.f32 %v25_v11 }
  0x15   :  { %85 = vpow2.f32 %v27_v12 }
  0x1e   :  { %v84_v13 = vpop.eup %83 }
  0x1f   :  { %v86_v14 = vpop.eup %85 }
  0x20   :  { %v29_v15 = vadd.f32 %v86_v14, %v84_v13 }
  0x22   :  { %v30_v16 = vrot.slane %v29_v15, 4 }
  0x24   :  { %v31_v17 = vadd.f32 %v30_v16, %v29_v15 }
  0x26   :  { %v32_v18 = vrot.slane %v31_v17, 2 }
  0x28   :  { %v33_v19 = vadd.f32 %v32_v18, %v31_v17 }
  0x2a   :  { %v34_v20 = vrot.slane %v33_v19, 1 }
  0x2c   :  { %v35_v23 = vadd.f32 %v34_v20, %v33_v19 }
  0x2e   :  { %v36_v24 = vmul.f32 %v35_v23, %v12_v21  ;;  %v37_v25 = vmul.f32 %v35_v23, %v13_v22 }
  0x30   :  { %v38_v26 = vsub.f32 %v36_v24, %v84_v13  ;;  %v39_v27 = vsub.f32 %v37_v25, %v86_v14 }
  0x32   :  { %v40_v28 = vmin.f32 %v38_v26, %v39_v27 }
  0x34   :  { %v41_v29 = vrot.slane %v40_v28, 4 }
  0x36   :  { %v42_v31 = vmin.f32 %v40_v28, %v41_v29 }
  0x38   :  { %v43_v32 = vrot.slane %v42_v31, 2 }
  0x3a   :  { %v44_v34 = vmin.f32 %v42_v31, %v43_v32 }
  0x3c   :  { %v45_v35 = vrot.slane %v44_v34, 1 }
  0x3e   :  { %v46_v37 = vmin.f32 %v44_v34, %v45_v35 }
  0x40   :  { %vm50_vm0 = vcmp.eq.f32.partialorder %v38_v26, %v46_v37  ;;  %vm51_vm1 = vcmp.eq.f32.partialorder %v39_v27, %v46_v37 }
  0x41   :  { %v52_v38 = vsel %vm50_vm0, %v48_v33, 16  ;;  %v53_v39 = vsel %vm51_vm1, %v49_v36, 16 }
  0x42   :  { %vm54_vm2 = vcmp.lt.s32.totalorder %v52_v38, %v53_v39 }
  0x43   :  { %v55_v40 = vsel %vm54_vm2, %v52_v38, %v53_v39 }
  0x44   :  { %v56_v41 = vrot.slane %v55_v40, 4 }
  0x46   :  { %vm57_vm3 = vcmp.lt.s32.totalorder %v55_v40, %v56_v41 }
  0x47   :  { %v58_v42 = vsel %vm57_vm3, %v55_v40, %v56_v41 }
  0x48   :  { %v59_v43 = vrot.slane %v58_v42, 2 }
  0x4a   :  { %vm60_vm4 = vcmp.lt.s32.totalorder %v58_v42, %v59_v43 }
  0x4b   :  { %v61_v44 = vsel %vm60_vm4, %v58_v42, %v59_v43 }
  0x4c   :  { %v62_v45 = vrot.slane %v61_v44, 1 }
  0x4e   :  { %vm63_vm5 = vcmp.lt.s32.totalorder %v61_v44, %v62_v45 }
  0x4f   :  { %v64_v46 = vsel %vm63_vm5, %v61_v44, %v62_v45 }
  0x50   :  { %vm65_vm6 = vcmp.ge.s32.totalorder %v64_v46, 16 }
  0x51   :  { %v66_v47 = vsel %vm65_vm6, 0, %v64_v46 }
  0x52   :  { %67 = vst [vmem:[#allocation2] sm:$0x1] %v66_v47 }
  0x53   :  { %98 = shalt.err (!%p95_p4)
}
  0x54   :  { %s99_s21 = scalar_lea.hbm %s153_s2, 16 }
  0x55   :  { %p100_p5 = scmp.ne.s32.totalorder %s153_s2, %s99_s21  ;;  %p103_p6 = scmp.lt.u32.totalorder %s99_s21, %s153_s2 }
  0x57   :  { %p105_p7 = pnand %p103_p6, %p100_p5 }
  0x59   :  { %108 = shalt.err (!%p105_p7)
}
  0x5a   :  { %77 = dma.vmem_to_hbm [thread:$0]  %s75_s16, 16, %s153_s2, [#allocation3]  }
  0x5b   :  { %109 = dma.done.wait [#allocation3], 16  }
  0x5c   :  { %110 = vsyncadd [#allocation3], 4294967280 }
  0x5d   :  { %81 = vsyncpa [#allocation3], 1 }

</bundles_post_ra>
